<compile_context>
chip_gen: v6e
topology: v6e:2x2x1
jax: 0.10.0
libtpu: 0.0.40
codegen_flags: <defaults>
</compile_context>

<pallas_src>
import jax
import jax.numpy as jnp
from jax import lax
from jax.experimental import pallas as pl
from jax.experimental.pallas import tpu as pltpu

_TARGET_BLOCK_BYTES = 1 << 20  # ~1 MiB per input block (per pipeline buffer)

# k-th order forward-difference coefficients along the time axis.
_FDIFF_COEFFS = {0: (1.0,), 1: (-1.0, 1.0), 2: (1.0, -2.0, 1.0)}


def _make_loss_kernel(loss_type, order, lo, hi, B, D, b_tile, t_out,
                      nb_inner, inv_count, need_batch_mask):
    coeffs = _FDIFF_COEFFS[order]

    def fdiff(ref):
        # order-th forward difference along T from shifted in-VMEM slices.
        out = None
        for k, ck in enumerate(coeffs):
            x = ref[:, pl.ds(k, t_out), :].astype(jnp.float32)
            term = x if ck == 1.0 else ck * x
            out = term if out is None else out + term
        return out

    def kernel(pred_ref, gt_ref, out_ref, acc_ref):
        c = pl.program_id(0)   # partial-sum / core axis ("parallel")
        i = pl.program_id(1)   # batch-block reduction axis ("arbitrary")

        @pl.when(i == 0)
        def _():
            acc_ref[...] = jnp.zeros_like(acc_ref)

        d = fdiff(pred_ref) - fdiff(gt_ref)

        if loss_type == "l1":
            val = jnp.abs(d)
        elif loss_type == "l2":
            val = d * d
        else:  # "l1_smooth" == torch.nn.SmoothL1Loss (beta = 1.0)
            a = jnp.abs(d)
            val = jnp.where(a < 1.0, 0.5 * d * d, a - 0.5)

        if need_batch_mask:
            # Mask rows from batch padding / duplicated tail blocks (may hold
            # garbage from the partial last DMA) so they contribute 0.
            blk = c * nb_inner + i
            b_idx = lax.broadcasted_iota(jnp.int32, (b_tile, 1, 1), 0) + blk * b_tile
            val = jnp.where(b_idx < B, val, 0.0)

        acc_ref[...] += val  # pure VPU adds, hidden under the input DMA

        @pl.when(i == pl.num_programs(1) - 1)
        def _():
            acc = acc_ref[...]
            if lo > 0 or hi < D:
                # Static feature-column selection, applied once at the end.
                col = lax.broadcasted_iota(jnp.int32, (1, 1, D), 2)
                acc = jnp.where((col >= lo) & (col < hi), acc, 0.0)
            total = jnp.sum(acc) * jnp.float32(inv_count)
            out_ref[...] = jnp.reshape(total, (1, 1))

    return kernel


def _pallas_recons_loss(pred, gt, *, loss_type, lo, hi, order):
    """mean(loss(fdiff_order(pred)[..., lo:hi] - fdiff_order(gt)[..., lo:hi]))."""
    assert pred.shape == gt.shape, (pred.shape, gt.shape)
    assert pred.ndim == 3, "expected (B, T, D) motion tensors"
    B, T, D = pred.shape
    hi = min(hi, D)
    lo = min(lo, hi)
    if B == 0 or T <= order or hi <= lo:
        # Degenerate / empty selection (guards a divide-by-zero mean).
        return jnp.zeros((), jnp.float32)

    t_out = T - order
    count = B * t_out * (hi - lo)

    # Size the batch tile so one input block is ~1 MiB in its native dtype.
    itemsize = max(jnp.dtype(pred.dtype).itemsize, jnp.dtype(gt.dtype).itemsize)
    bytes_per_batch = T * D * itemsize
    b_tile = int(max(1, min(B, _TARGET_BLOCK_BYTES // bytes_per_batch)))
    nb = pl.cdiv(B, b_tile)                 # number of batch blocks
    num_partials = 2 if nb >= 2 else 1      # v7x: one partial sum per TensorCore
    nb_inner = pl.cdiv(nb, num_partials)
    need_batch_mask = (b_tile * nb_inner * num_partials != B)

    kernel = _make_loss_kernel(loss_type, order, lo, hi, B, D, b_tile, t_out,
                               nb_inner, 1.0 / float(count), need_batch_mask)

    def in_map(c, i):
        # Clamp duplicated tail blocks to a valid block; kernel masks them out.
        return (jnp.minimum(c * nb_inner + i, nb - 1), 0, 0)

    out = pl.pallas_call(
        kernel,
        out_shape=jax.ShapeDtypeStruct((num_partials, 1), jnp.float32),
        grid_spec=pltpu.PrefetchScalarGridSpec(
            num_scalar_prefetch=0,
            grid=(num_partials, nb_inner),
            in_specs=[
                pl.BlockSpec((b_tile, T, D), in_map),
                pl.BlockSpec((b_tile, T, D), in_map),
            ],
            out_specs=pl.BlockSpec((1, 1), lambda c, i: (c, 0)),
            scratch_shapes=[pltpu.VMEM((b_tile, t_out, D), jnp.float32)],
        ),
        compiler_params=pltpu.CompilerParams(
            dimension_semantics=("parallel", "arbitrary")),
    )(pred, gt)
    return jnp.sum(out)


class ReConsLoss:
    """JAX/Pallas port of the PyTorch ReConsLoss module (pure loss, no params)."""

    def __init__(self, recons_loss: str = "l1", nb_joints: int = 22):
        assert recons_loss in ("l1", "l2", "l1_smooth")
        self.loss_type = recons_loss
        self.nb_joints = nb_joints
        self.motion_dim = 272

    def __call__(self, motion_pred, motion_gt):
        return _pallas_recons_loss(motion_pred, motion_gt, loss_type=self.loss_type,
                                   lo=0, hi=self.motion_dim, order=0)

    forward = __call__

    def forward_vel(self, motion_pred, motion_gt):
        return _pallas_recons_loss(motion_pred, motion_gt, loss_type=self.loss_type,
                                   lo=8, hi=8 + 3 * self.nb_joints, order=0)

    def forward_acc(self, motion_pred, motion_gt):
        return _pallas_recons_loss(motion_pred, motion_gt, loss_type=self.loss_type,
                                   lo=8, hi=8 + 3 * self.nb_joints, order=1)

    def forward_acc_vel(self, motion_pred, motion_gt):
        return _pallas_recons_loss(motion_pred, motion_gt, loss_type=self.loss_type,
                                   lo=8, hi=8 + 3 * self.nb_joints, order=2)

    def forward_root(self, motion_pred, motion_gt):
        return _pallas_recons_loss(motion_pred, motion_gt, loss_type=self.loss_type,
                                   lo=0, hi=8, order=0)


if __name__ == "__main__":
    nbj = 22
    J = 3 * nbj

    def ref_elem(d, lt):
        if lt == "l1":
            return jnp.abs(d)
        if lt == "l2":
            return d * d
        a = jnp.abs(d)
        return jnp.where(a < 1.0, 0.5 * d * d, a - 0.5)

    def ref_all(p, g, lt):
        p = p.astype(jnp.float32)
        g = g.astype(jnp.float32)
        dv = lambda x: x[:, 1:, :] - x[:, :-1, :]
        pj, gj = p[..., 8:8 + J], g[..., 8:8 + J]
        return (
            jnp.mean(ref_elem(p[..., :272] - g[..., :272], lt)),
            jnp.mean(ref_elem(pj - gj, lt)),
            jnp.mean(ref_elem(dv(pj) - dv(gj), lt)),
            jnp.mean(ref_elem(dv(dv(pj)) - dv(dv(gj)), lt)),
            jnp.mean(ref_elem(p[..., :8] - g[..., :8], lt)),
        )

    def run_all(mod, p, g):
        return (
            mod(p, g),
            mod.forward_vel(p, g),
            mod.forward_acc(p, g),
            mod.forward_acc_vel(p, g),
            mod.forward_root(p, g),
        )

    key = jax.random.PRNGKey(0)
    k1, k2, k3, k4 = jax.random.split(key, 4)

    # Small shape consistent with the module: (B, T, D) with D >= motion_dim(=272).
    B, T, D = 2, 8, 288
    motion_pred = jax.random.normal(k1, (B, T, D), dtype=jnp.float32)
    motion_gt = jax.random.normal(k2, (B, T, D), dtype=jnp.float32)

    for lt in ("l1", "l2", "l1_smooth"):
        mod = ReConsLoss(recons_loss=lt, nb_joints=nbj)
        got = run_all(mod, motion_pred, motion_gt)
        jax.block_until_ready(got)
        want = ref_all(motion_pred, motion_gt, lt)
        for g_, w_ in zip(got, want):
            assert jnp.allclose(g_, w_, rtol=1e-5, atol=1e-6), (lt, g_, w_)

    # Second check: multiple batch blocks, ragged tail, 2 partial sums, and a
    # bf16 input exercising the native-dtype (no wrapper cast) path.
    B2, T2, D2 = 25, 96, 272
    p2 = jax.random.normal(k3, (B2, T2, D2), dtype=jnp.float32).astype(jnp.bfloat16)
    g2 = jax.random.normal(k4, (B2, T2, D2), dtype=jnp.float32).astype(jnp.bfloat16)
    mod = ReConsLoss(recons_loss="l1", nb_joints=nbj)
    got2 = run_all(mod, p2, g2)
    jax.block_until_ready(got2)
    want2 = ref_all(p2, g2, "l1")
    for g_, w_ in zip(got2, want2):
        assert jnp.allclose(g_, w_, rtol=1e-4, atol=1e-5), (g_, w_)

    print("KERNEL_OK")
</pallas_src>

<mosaic_0001>
module attributes {stable_mosaic.version = 11 : i64} {
  func.func @kernel(%arg0: i32, %arg1: i32, %arg2: memref<2x8x288xf32, #tpu.memory_space<vmem>>, %arg3: memref<2x8x288xf32, #tpu.memory_space<vmem>>, %arg4: memref<1x1xf32, #tpu.memory_space<vmem>>, %arg5: memref<2x8x288xf32, #tpu.memory_space<vmem>>) attributes {dimension_semantics = [#tpu.dimension_semantics<parallel>, #tpu.dimension_semantics<arbitrary>], iteration_bounds = array<i64: 1, 1>, scalar_prefetch = 0 : i64, scratch_operands = 1 : i64, tpu.core_type = #tpu.core_type<tc>, window_params = [{transform_indices = @transform_0, window_bounds = array<i64: 2, 8, 288>}, {transform_indices = @transform_1, window_bounds = array<i64: 2, 8, 288>}, {transform_indices = @transform_2, window_bounds = array<i64: 1, 1>}]} {
    %c0_i32 = arith.constant 0 : i32
    %0 = arith.cmpi eq, %arg1, %c0_i32 : i32
    %1 = arith.extui %0 : i1 to i32
    %c0_i32_0 = arith.constant 0 : i32
    %2 = arith.cmpi ne, %1, %c0_i32_0 : i32
    scf.if %2 {
      %cst = arith.constant 0.000000e+00 : f32
      %13 = vector.broadcast %cst : f32 to vector<2x8x288xf32>
      %c0_14 = arith.constant 0 : index
      %c0_15 = arith.constant 0 : index
      %c0_16 = arith.constant 0 : index
      %14 = vector.load %arg5[%c0_14, %c0_15, %c0_16] : memref<2x8x288xf32, #tpu.memory_space<vmem>>, vector<2x8x288xf32>
      tpu.vector_store %arg5[%c0_14, %c0_15, %c0_16], %13 {strides = array<i32>} : memref<2x8x288xf32, #tpu.memory_space<vmem>>, vector<2x8x288xf32>,
    } else {
    }
    %c0 = arith.constant 0 : index
    %c0_1 = arith.constant 0 : index
    %c0_2 = arith.constant 0 : index
    %3 = vector.load %arg2[%c0, %c0_1, %c0_2] : memref<2x8x288xf32, #tpu.memory_space<vmem>>, vector<2x8x288xf32>
    %c0_3 = arith.constant 0 : index
    %c0_4 = arith.constant 0 : index
    %c0_5 = arith.constant 0 : index
    %4 = vector.load %arg3[%c0_3, %c0_4, %c0_5] : memref<2x8x288xf32, #tpu.memory_space<vmem>>, vector<2x8x288xf32>
    %5 = arith.subf %3, %4 : vector<2x8x288xf32>
    %6 = math.absf %5 : vector<2x8x288xf32>
    %c0_6 = arith.constant 0 : index
    %c0_7 = arith.constant 0 : index
    %c0_8 = arith.constant 0 : index
    %7 = vector.load %arg5[%c0_6, %c0_7, %c0_8] : memref<2x8x288xf32, #tpu.memory_space<vmem>>, vector<2x8x288xf32>
    %8 = arith.addf %7, %6 : vector<2x8x288xf32>
    %c0_9 = arith.constant 0 : index
    %c0_10 = arith.constant 0 : index
    %c0_11 = arith.constant 0 : index
    %9 = vector.load %arg5[%c0_9, %c0_10, %c0_11] : memref<2x8x288xf32, #tpu.memory_space<vmem>>, vector<2x8x288xf32>
    tpu.vector_store %arg5[%c0_9, %c0_10, %c0_11], %8 {strides = array<i32>} : memref<2x8x288xf32, #tpu.memory_space<vmem>>, vector<2x8x288xf32>,
    %c0_i32_12 = arith.constant 0 : i32
    %10 = arith.cmpi eq, %arg1, %c0_i32_12 : i32
    %11 = arith.extui %10 : i1 to i32
    %c0_i32_13 = arith.constant 0 : i32
    %12 = arith.cmpi ne, %11, %c0_i32_13 : i32
    scf.if %12 {
      %c0_14 = arith.constant 0 : index
      %c0_15 = arith.constant 0 : index
      %c0_16 = arith.constant 0 : index
      %13 = vector.load %arg5[%c0_14, %c0_15, %c0_16] : memref<2x8x288xf32, #tpu.memory_space<vmem>>, vector<2x8x288xf32>
      %14 = tpu.iota {dimensions = array<i32: 2>} : vector<1x1x288xi32>
      %c0_i32_17 = arith.constant 0 : i32
      %15 = vector.broadcast %c0_i32_17 : i32 to vector<1x1x288xi32>
      %16 = arith.cmpi sge, %14, %15 : vector<1x1x288xi32>
      %c272_i32 = arith.constant 272 : i32
      %17 = vector.broadcast %c272_i32 : i32 to vector<1x1x288xi32>
      %18 = arith.cmpi slt, %14, %17 : vector<1x1x288xi32>
      %19 = arith.andi %16, %18 : vector<1x1x288xi1>
      %cst = arith.constant 0.000000e+00 : f32
      %20 = vector.shape_cast %19 : vector<1x1x288xi1> to vector<1x1x288xi1>
      %21 = vector.broadcast %20 : vector<1x1x288xi1> to vector<2x8x288xi1>
      %22 = vector.broadcast %cst : f32 to vector<2x8x288xf32>
      %23 = arith.select %21, %13, %22 : vector<2x8x288xi1>, vector<2x8x288xf32>
      %24 = vector.shape_cast %23 : vector<2x8x288xf32> to vector<1x2x8x288xf32>
      %cst_18 = arith.constant dense<0.000000e+00> : vector<1xf32>
      %25 = vector.multi_reduction <add>, %24, %cst_18 [1, 2, 3] : vector<1x2x8x288xf32> to vector<1xf32>
      %26 = vector.shape_cast %25 : vector<1xf32> to vector<1x1x1x1xf32>
      %27 = vector.extract %26[0, 0, 0, 0] : f32 from vector<1x1x1x1xf32>
      %cst_19 = arith.constant 2.29779413E-4 : f32
      %28 = arith.mulf %27, %cst_19 : f32
      %29 = vector.broadcast %28 : f32 to vector<1x1xf32>
      %c0_20 = arith.constant 0 : index
      %c0_21 = arith.constant 0 : index
      %30 = vector.load %arg4[%c0_20, %c0_21] : memref<1x1xf32, #tpu.memory_space<vmem>>, vector<1x1xf32>
      tpu.vector_store %arg4[%c0_20, %c0_21], %29 {strides = array<i32>} : memref<1x1xf32, #tpu.memory_space<vmem>>, vector<1x1xf32>,
    } else {
    }
    return
  }
  func.func @transform_0(%arg0: i32, %arg1: i32) -> (i32, i32, i32) {
    %c1_i32 = arith.constant 1 : i32
    %0 = arith.muli %arg0, %c1_i32 : i32
    %1 = arith.addi %0, %arg1 : i32
    %c0_i32 = arith.constant 0 : i32
    %2 = arith.minsi %1, %c0_i32 : i32
    %c0_i32_0 = arith.constant 0 : i32
    %c0_i32_1 = arith.constant 0 : i32
    %c0_i32_2 = arith.constant 0 : i32
    return %2, %c0_i32_0, %c0_i32_1 : i32, i32, i32
  }
  func.func @transform_1(%arg0: i32, %arg1: i32) -> (i32, i32, i32) {
    %c1_i32 = arith.constant 1 : i32
    %0 = arith.muli %arg0, %c1_i32 : i32
    %1 = arith.addi %0, %arg1 : i32
    %c0_i32 = arith.constant 0 : i32
    %2 = arith.minsi %1, %c0_i32 : i32
    %c0_i32_0 = arith.constant 0 : i32
    %c0_i32_1 = arith.constant 0 : i32
    %c0_i32_2 = arith.constant 0 : i32
    return %2, %c0_i32_0, %c0_i32_1 : i32, i32, i32
  }
  func.func @transform_2(%arg0: i32, %arg1: i32) -> (i32, i32) {
    %c0_i32 = arith.constant 0 : i32
    %c0_i32_0 = arith.constant 0 : i32
    return %arg0, %c0_i32 : i32, i32
  }
}

</mosaic_0001>

<bundles_post_ra>
// kernel: tpu_custom_call.1
= control target key start
LH: loop header
LB: loop body
LE: loop exit
PB: predicated region body
PF: predicated region fallthrough
CT: control target
= control target key end

     0   :  { %7 = vsyncpa [#allocation4], 0  ;;  %s300_s0 = inlined_call_operand.hbm [shape: f32[2,8,288], index: 0, kind: input, shape index: {}]   ;;  %s301_s1 = inlined_call_operand.hbm [shape: f32[2,8,288], index: 1, kind: input, shape index: {}]   ;;  %s302_s2 = inlined_call_operand.hbm [shape: f32[1,1], index: 2, kind: output, shape index: {}]  }
   0x1   :  { %8 = vsyncpa [#allocation7], 0 }
   0x2   :  { %9 = vsyncpa [#allocation5], 0  ;;  %s264_s9 = smov [#allocation3]  }
   0x3   :  { %s22_s10 = sshll.u32 %s264_s9, 4  ;;  %s23_s10 = int_to_ptr.vmem [resolvable:$true] %s22_s10 }
   0x4   :  { %s206_s11 = scalar_lea.vmem %s23_s10, 768  ;;  %p211_p1 = scmp.lt.s32.totalorder %s23_s10, %s23_s10 }
   0x5   :  { %p207_p0 = scmp.ne.s32.totalorder %s23_s10, %s206_s11  ;;  %p212_p2 = scmp.lt.s32.totalorder %s206_s11, %s206_s11 }
   0x7   :  { %p213_p3 = por %p212_p2, %p211_p1 }
   0x9   :  { %p214_p4 = pnand %p213_p3, %p207_p0 }
   0xb   :  { %217 = shalt.err (!%p214_p4)
}
   0xc   :  { %s265_s12 = smov 384   ;;  %s266_s13 = smov 24  }
   0xd   :  { %28 = dma.hbm_to_vmem [thread:$0]  %s300_s0, 768, %s23_s10, [#allocation4], %s265_s12, %s265_s12, %s266_s13  }
   0xe   :  { %s267_s16 = smov [#allocation6]  }
   0xf   :  { %s41_s17 = sshll.u32 %s267_s16, 4  ;;  %s42_s17 = int_to_ptr.vmem [resolvable:$true] %s41_s17 }
  0x10   :  { %s226_s18 = scalar_lea.vmem %s42_s17, 768  ;;  %p231_p6 = scmp.lt.s32.totalorder %s42_s17, %s42_s17 }
  0x11   :  { %p227_p5 = scmp.ne.s32.totalorder %s42_s17, %s226_s18  ;;  %p232_p7 = scmp.lt.s32.totalorder %s226_s18, %s226_s18 }
  0x13   :  { %p233_p8 = por %p232_p7, %p231_p6 }
  0x15   :  { %p234_p9 = pnand %p233_p8, %p227_p5 }
  0x17   :  { %237 = shalt.err (!%p234_p9)
}
  0x18   :  { %47 = dma.hbm_to_vmem [thread:$0]  %s301_s1, 768, %s42_s17, [#allocation7], %s265_s12, %s265_s12, %s266_s13  }
  0x19   :  { %258 = dma.done.wait [#allocation4], 768  }
  0x1a   :  { %259 = vsyncadd [#allocation4], 4294966528 }
  0x1b   :  { %260 = dma.done.wait [#allocation7], 768  }
  0x1c   :  { %261 = vsyncadd [#allocation7], 4294966528  ;;  %vm68_vm0 = vcmask 261120   ;;  %v268_v0 = vmov 0.0   ;;  %v73_v1 = vld [vmem:[#allocation3] sm:$0xff]  ;;  %v74_v2 = vld [vmem:[#allocation3 + $0x8] sm:$0xff]  ;;  %v125_v4 = vlaneseq }
  0x1d   :  { %69 = vst.msk [vmem:[#allocation2 + $0x10] sm:$0xff] %vm68_vm0, %v268_v0  ;;  %72 = vst.msk [vmem:[#allocation2 + $0x28] sm:$0xff] %vm68_vm0, %v268_v0  ;;  %v75_v3 = vld [vmem:[#allocation3 + $0x10] sm:$0xff]  ;;  %v76_v5 = vld [vmem:[#allocation3 + $0x18] sm:$0xff]  ;;  %s269_s0 = smov [#allocation8]   ;;  %vm168_vm2 = vcmask 0  }
  0x1e   :  { %v77_v6 = vld [vmem:[#allocation3 + $0x20] sm:$0xff]  ;;  %v78_v7 = vld [vmem:[#allocation3 + $0x28] sm:$0xff]  ;;  %v79_v8 = vld [vmem:[#allocation6] sm:$0xff]  ;;  %v126_v22 = vand.u32 127, %v125_v4  ;;  %s176_s1 = sshll.u32 %s269_s0, 4  ;;  %s177_s1 = int_to_ptr.vmem [resolvable:$true] %s176_s1 }
  0x1f   :  { %v80_v9 = vld [vmem:[#allocation6 + $0x8] sm:$0xff]  ;;  %v81_v10 = vld [vmem:[#allocation6 + $0x10] sm:$0xff]  ;;  %v82_v11 = vld [vmem:[#allocation6 + $0x18] sm:$0xff]  ;;  %v85_v14 = vsub.f32 %v73_v1, %v79_v8  ;;  %s238_s23 = scalar_lea.vmem %s177_s1, 16  ;;  %s242_s24 = scalar_lea.vmem %s177_s1, 32 }
  0x20   :  { %v83_v12 = vld [vmem:[#allocation6 + $0x20] sm:$0xff]  ;;  %v84_v13 = vld [vmem:[#allocation6 + $0x28] sm:$0xff]  ;;  %v86_v15 = vsub.f32 %v74_v2, %v80_v9  ;;  %v87_v16 = vsub.f32 %v75_v3, %v81_v10  ;;  %v88_v17 = vsub.f32 %v76_v5, %v82_v11  ;;  %v128_v31 = vadd.s32 256, %v126_v22  ;;  %p239_p10 = scmp.ne.s32.totalorder %s177_s1, %s238_s23  ;;  %p243_p11 = scmp.lt.s32.totalorder %s177_s1, %s177_s1 }
  0x21   :  { %v89_v18 = vsub.f32 %v77_v6, %v83_v12  ;;  %v90_v19 = vsub.f32 %v78_v7, %v84_v13  ;;  %v91_v23 = vand.u32 2147483647, %v85_v14  ;;  %p244_p12 = scmp.lt.s32.totalorder %s242_s24, %s238_s23 }
  0x22   :  { %v92_v24 = vand.u32 2147483647, %v86_v15  ;;  %v93_v25 = vand.u32 2147483647, %v87_v16  ;;  %v94_v26 = vand.u32 2147483647, %v88_v17 }
  0x23   :  { %v95_v27 = vand.u32 2147483647, %v89_v18  ;;  %v96_v28 = vand.u32 2147483647, %v90_v19  ;;  %vm134_vm1 = vcmp.lt.s32.totalorder %v128_v31, 272  ;;  %p245_p13 = por %p244_p12, %p243_p11 }
  0x24   :  { %v99_v20 = vld [vmem:[#allocation2 + $0x10] sm:$0xff]  ;;  %v102_v21 = vld [vmem:[#allocation2 + $0x28] sm:$0xff]  ;;  %v150_v32 = vadd.f32 %v92_v24, %v91_v23 }
  0x25   :  { %v105_v29 = vadd.f32 %v99_v20, %v93_v25  ;;  %v108_v30 = vadd.f32 %v102_v21, %v96_v28  ;;  %p246_p0 = pnand %p245_p13, %p239_p10 }
  0x27   :  { %112 = vst.msk [vmem:[#allocation2 + $0x10] sm:$0xff] %vm68_vm0, %v105_v29  ;;  %115 = vst.msk [vmem:[#allocation2 + $0x28] sm:$0xff] %vm68_vm0, %v108_v30 }
  0x2e   :  { %v121_v33 = vld [vmem:[#allocation2 + $0x10] sm:$0xff]  ;;  %v124_v34 = vld [vmem:[#allocation2 + $0x28] sm:$0xff] }
  0x2f   :  { %v146_v35 = vsel %vm134_vm1, %v121_v33, 0.0  ;;  %v149_v37 = vsel %vm134_vm1, %v124_v34, 0.0 }
  0x30   :  { %v151_v36 = vsel %vm68_vm0, %v146_v35, 0.0  ;;  %v155_v40 = vsel %vm68_vm0, %v149_v37, 0.0 }
  0x31   :  { %v152_v38 = vadd.f32 %v151_v36, %v150_v32 }
  0x33   :  { %v153_v39 = vadd.f32 %v152_v38, %v94_v26 }
  0x35   :  { %v154_v41 = vadd.f32 %v153_v39, %v95_v27 }
  0x37   :  { %v156_v42 = vadd.f32 %v155_v40, %v154_v41 }
  0x39   :  { %157 = vadd.xlane.f32.xlu0 %v156_v42 }
  0xc2   :  { %v158_v43 = vpop.xlane.xlu0 %157 }
  0xc3   :  { %v159_v44 = vrot.slane %v158_v43, 4 }
  0xc5   :  { %v160_v45 = vadd.f32 %v159_v44, %v158_v43 }
  0xc7   :  { %v161_v46 = vrot.slane %v160_v45, 2 }
  0xc9   :  { %v162_v47 = vadd.f32 %v161_v46, %v160_v45 }
  0xcb   :  { %v163_v48 = vrot.slane %v162_v47, 1 }
  0xcd   :  { %v164_v49 = vadd.f32 %v163_v48, %v162_v47 }
  0xcf   :  { %190 = vpush %v164_v49 }
 0x100   :  { %s191_s21 = spop %190 }
 0x101   :  { %s166_s22 = smul.f32 0.00022977941, %s191_s21 }
 0x103   :  { %v167_v50 = vstv %s166_s22 }
 0x104   :  { %169 = vst.msk [vmem:[#allocation8] sm:$0x1] %vm168_vm2, %v167_v50 }
 0x105   :  { %249 = shalt.err (!%p246_p0)
}
 0x106   :  { %179 = dma.vmem_to_hbm [thread:$0]  %s177_s1, 16, %s302_s2, [#allocation5]  }
 0x107   :  { %262 = dma.done.wait [#allocation5], 16  }
 0x108   :  { %263 = vsyncadd [#allocation5], 4294967280 }
 0x109   :  { %183 = vsyncpa [#allocation4], 1 }
 0x10a   :  { %184 = vsyncpa [#allocation7], 1 }
 0x10b   :  { %185 = vsyncpa [#allocation5], 1 }

</bundles_post_ra>
